<compile_context>
chip_gen: v6e
topology: v6e:2x2x1
jax: 0.10.0
libtpu: 0.0.40
codegen_flags: <defaults>
</compile_context>

<pallas_src>
import math
from functools import partial

import jax
import jax.numpy as jnp
from jax.experimental import pallas as pl
from jax.experimental.pallas import tpu as pltpu


_LN_EPS = 1e-5


def _erf_approx(z):
    # Abramowitz & Stegun 7.1.26 rational approximation (max abs err ~1.5e-7).
    # Keeps the kernel on ops that always lower in Mosaic (abs/exp/mul/where)
    # while matching PyTorch's exact-erf GELU to ~1e-7.
    p = 0.3275911
    a1, a2, a3, a4, a5 = (0.254829592, -0.284496736, 1.421413741,
                          -1.453152027, 1.061405429)
    az = jnp.abs(z)
    t = 1.0 / (1.0 + p * az)
    poly = ((((a5 * t + a4) * t + a3) * t + a2) * t + a1) * t
    e = 1.0 - poly * jnp.exp(-az * az)
    return jnp.where(z >= 0, e, -e)


def _gelu_exact(x):
    # PyTorch nn.GELU() default ("exact" erf formulation).
    return 0.5 * x * (1.0 + _erf_approx(x * (1.0 / math.sqrt(2.0))))


def _ln_normalize(x):
    # LayerNorm without the affine part (gamma/beta are folded into the
    # weights of the matmul that consumes this output).
    mu = jnp.mean(x, axis=-1, keepdims=True)
    xc = x - mu
    var = jnp.mean(xc * xc, axis=-1, keepdims=True)
    return xc * jax.lax.rsqrt(var + _LN_EPS)


def encoder_kernel(x_ref, wqkv_ref, bqkv_ref, w1_ref, b1_ref, w2_ref, b2_ref,
                   o_ref, *, n_heads, head_dim):
    D = n_heads * head_dim
    x = x_ref[0]                                   # (S, D) f32, lane-dense

    # ---- LayerNorm 1 (affine folded into wqkv/bqkv) ----
    xn = _ln_normalize(x)

    # ---- fused block-diagonal QKV projection (scale + LN affine folded) ----
    qkv = jnp.dot(xn, wqkv_ref[...],
                  preferred_element_type=jnp.float32) + bqkv_ref[...]
    q = qkv[:, 0 * D:1 * D]                        # already scaled by 1/sqrt(d)
    k = qkv[:, 1 * D:2 * D]
    v = qkv[:, 2 * D:3 * D]

    # ---- per-head attention, deferred softmax normalization ----
    head_outs = []
    for h in range(n_heads):                       # static unroll, tiny H
        sl = slice(h * head_dim, (h + 1) * head_dim)
        qh, kh, vh = q[:, sl], k[:, sl], v[:, sl]
        s = jax.lax.dot_general(qh, kh, (((1,), (1,)), ((), ())),
                                preferred_element_type=jnp.float32)  # (S, S)
        m = jnp.max(s, axis=-1, keepdims=True)
        p = jnp.exp(s - m)
        o_un = jnp.dot(p, vh, preferred_element_type=jnp.float32)    # (S, d)
        # approx=False keeps the tight tolerance; flip to approx=True (EUP
        # vrcp) when the tolerance can be relaxed.
        inv = pl.reciprocal(jnp.sum(p, axis=-1, keepdims=True), approx=False)
        head_outs.append(o_un * inv)
    attn = jnp.concatenate(head_outs, axis=-1)     # (S, D) == cat over heads

    out1 = x + attn                                # residual 1

    # ---- LayerNorm 2 (affine folded into w1/b1) ----
    on = _ln_normalize(out1)

    # ---- MLP: Linear -> GELU -> Linear ----
    h1 = jnp.dot(on, w1_ref[...],
                 preferred_element_type=jnp.float32) + b1_ref[...]
    h1 = _gelu_exact(h1)
    h2 = jnp.dot(h1, w2_ref[...],
                 preferred_element_type=jnp.float32) + b2_ref[...]

    o_ref[0] = (out1 + h2).astype(o_ref.dtype)     # residual 2, lane-dense


def _block_diag(w):
    """(H, d, d) per-head weights -> (H*d, H*d) block-diagonal matrix."""
    H, d, _ = w.shape
    out = jnp.zeros((H * d, H * d), dtype=w.dtype)
    for h in range(H):
        out = out.at[h * d:(h + 1) * d, h * d:(h + 1) * d].set(w[h])
    return out


def transformer_encoder_forward(x, params, *, n_heads):
    """x: (B, S, D) f32. params: dict of weights (see __main__)."""
    B, S, D = x.shape
    head_dim = D // n_heads
    mlp_dim = params["w1"].shape[1]
    scale = 1.0 / math.sqrt(head_dim)

    # --- wrapper-side weight packing/folding (done once, outside the grid) ---
    # 1) Pack per-head Q/K/V Linears into one (D, 3D) block-diagonal matmul;
    #    fold the attention scale into the Q block.
    wqkv = jnp.concatenate([_block_diag(params["wq"]) * scale,
                            _block_diag(params["wk"]),
                            _block_diag(params["wv"])], axis=-1)        # (D,3D)
    bqkv = jnp.concatenate([params["bq"].reshape(-1) * scale,
                            params["bk"].reshape(-1),
                            params["bv"].reshape(-1)]).reshape(1, 3 * D)
    # 2) Fold LayerNorm1 affine (gamma1, beta1) into wqkv/bqkv:
    #    (xhat*g + b) @ W + c == xhat @ (g^T * W) + (b @ W + c)
    g1 = params["g1"].reshape(D, 1)
    wqkv_f = g1 * wqkv
    bqkv_f = bqkv + params["be1"].reshape(1, D) @ wqkv
    # 3) Fold LayerNorm2 affine (gamma2, beta2) into the first MLP Linear.
    g2 = params["g2"].reshape(D, 1)
    w1_f = g2 * params["w1"]
    b1_f = params["b1"].reshape(1, mlp_dim) + \
        params["be2"].reshape(1, D) @ params["w1"]
    w2 = params["w2"]
    b2 = params["b2"].reshape(1, D)

    kernel = partial(encoder_kernel, n_heads=n_heads, head_dim=head_dim)

    const = lambda b: (0, 0)   # weights: same block every step -> no re-DMA
    out = pl.pallas_call(
        kernel,
        out_shape=jax.ShapeDtypeStruct((B, S, D), x.dtype),
        grid_spec=pltpu.PrefetchScalarGridSpec(
            num_scalar_prefetch=0,
            grid=(B,),
            in_specs=[
                pl.BlockSpec((1, S, D), lambda b: (b, 0, 0)),   # x
                pl.BlockSpec((D, 3 * D), const),                # wqkv (fused)
                pl.BlockSpec((1, 3 * D), const),                # bqkv (fused)
                pl.BlockSpec((D, mlp_dim), const),              # w1 (LN2 folded)
                pl.BlockSpec((1, mlp_dim), const),              # b1 (LN2 folded)
                pl.BlockSpec((mlp_dim, D), const),              # w2
                pl.BlockSpec((1, D), const),                    # b2
            ],
            out_specs=pl.BlockSpec((1, S, D), lambda b: (b, 0, 0)),
        ),
        compiler_params=pltpu.CompilerParams(
            dimension_semantics=("parallel",)),  # B>=2 keeps both v7x TCs busy
    )(x, wqkv_f, bqkv_f, w1_f, b1_f, w2, b2)
    return out


def reference_encoder(x, params, *, n_heads):
    """Pure-JAX mirror of the PyTorch TransformerEncoder forward."""
    B, S, D = x.shape
    d = D // n_heads

    def layernorm(v, g, b):
        mu = jnp.mean(v, axis=-1, keepdims=True)
        var = jnp.mean((v - mu) ** 2, axis=-1, keepdims=True)
        return (v - mu) / jnp.sqrt(var + _LN_EPS) * g + b

    ln1 = layernorm(x, params["g1"], params["be1"])
    xh = ln1.reshape(B, S, n_heads, d)
    outs = []
    for i in range(n_heads):
        xi = xh[:, :, i]                                    # (B, S, d)
        q = xi @ params["wq"][i] + params["bq"][i]
        k = xi @ params["wk"][i] + params["bk"][i]
        v = xi @ params["wv"][i] + params["bv"][i]
        s = (q @ jnp.swapaxes(k, -2, -1)) / math.sqrt(d)
        outs.append(jax.nn.softmax(s, axis=-1) @ v)
    out1 = x + jnp.concatenate(outs, axis=-1)
    ln2 = layernorm(out1, params["g2"], params["be2"])
    h = jax.nn.gelu(ln2 @ params["w1"] + params["b1"], approximate=False)
    mlp = h @ params["w2"] + params["b2"]
    return out1 + mlp


if __name__ == "__main__":
    B, S, token_dim, n_heads, mlp_dim = 2, 8, 32, 4, 64
    head_dim = token_dim // n_heads

    keys = jax.random.split(jax.random.PRNGKey(0), 15)
    (k_x, k_wq, k_bq, k_wk, k_bk, k_wv, k_bv,
     k_g1, k_be1, k_g2, k_be2, k_w1, k_b1, k_w2, k_b2) = keys

    x = jax.random.normal(k_x, (B, S, token_dim), dtype=jnp.float32)

    bh = 1.0 / math.sqrt(head_dim)      # nn.Linear-style uniform init bounds
    b1b = 1.0 / math.sqrt(token_dim)
    b2b = 1.0 / math.sqrt(mlp_dim)
    u = lambda k, shp, bound: jax.random.uniform(
        k, shp, minval=-bound, maxval=bound, dtype=jnp.float32)

    params = dict(
        wq=u(k_wq, (n_heads, head_dim, head_dim), bh),
        bq=u(k_bq, (n_heads, head_dim), bh),
        wk=u(k_wk, (n_heads, head_dim, head_dim), bh),
        bk=u(k_bk, (n_heads, head_dim), bh),
        wv=u(k_wv, (n_heads, head_dim, head_dim), bh),
        bv=u(k_bv, (n_heads, head_dim), bh),
        g1=1.0 + 0.1 * jax.random.normal(k_g1, (1, token_dim), jnp.float32),
        be1=0.1 * jax.random.normal(k_be1, (1, token_dim), jnp.float32),
        g2=1.0 + 0.1 * jax.random.normal(k_g2, (1, token_dim), jnp.float32),
        be2=0.1 * jax.random.normal(k_be2, (1, token_dim), jnp.float32),
        w1=u(k_w1, (token_dim, mlp_dim), b1b),
        b1=u(k_b1, (1, mlp_dim), b1b),
        w2=u(k_w2, (mlp_dim, token_dim), b2b),
        b2=u(k_b2, (1, token_dim), b2b),
    )

    out = transformer_encoder_forward(x, params, n_heads=n_heads)
    out = jax.block_until_ready(out)

    ref = reference_encoder(x, params, n_heads=n_heads)
    assert out.shape == (B, S, token_dim)
    assert jnp.allclose(out, ref, atol=1e-4, rtol=1e-4), \
        float(jnp.max(jnp.abs(out - ref)))

    print("KERNEL_OK")
</pallas_src>

<mosaic_0001>
module attributes {stable_mosaic.version = 11 : i64} {
  func.func @encoder_kernel(%arg0: i32, %arg1: memref<1x8x32xf32, #tpu.memory_space<vmem>>, %arg2: memref<32x96xf32, #tpu.memory_space<vmem>>, %arg3: memref<1x96xf32, #tpu.memory_space<vmem>>, %arg4: memref<32x64xf32, #tpu.memory_space<vmem>>, %arg5: memref<1x64xf32, #tpu.memory_space<vmem>>, %arg6: memref<64x32xf32, #tpu.memory_space<vmem>>, %arg7: memref<1x32xf32, #tpu.memory_space<vmem>>, %arg8: memref<1x8x32xf32, #tpu.memory_space<vmem>>) attributes {dimension_semantics = [#tpu.dimension_semantics<parallel>], iteration_bounds = array<i64: 2>, scalar_prefetch = 0 : i64, scratch_operands = 0 : i64, tpu.core_type = #tpu.core_type<tc>, window_params = [{transform_indices = @transform_0, window_bounds = array<i64: 1, 8, 32>}, {pipeline_mode = #tpu.pipeline_mode<synchronous>, transform_indices = @transform_1, window_bounds = array<i64: 32, 96>}, {pipeline_mode = #tpu.pipeline_mode<synchronous>, transform_indices = @transform_2, window_bounds = array<i64: 1, 96>}, {pipeline_mode = #tpu.pipeline_mode<synchronous>, transform_indices = @transform_3, window_bounds = array<i64: 32, 64>}, {pipeline_mode = #tpu.pipeline_mode<synchronous>, transform_indices = @transform_4, window_bounds = array<i64: 1, 64>}, {pipeline_mode = #tpu.pipeline_mode<synchronous>, transform_indices = @transform_5, window_bounds = array<i64: 64, 32>}, {pipeline_mode = #tpu.pipeline_mode<synchronous>, transform_indices = @transform_6, window_bounds = array<i64: 1, 32>}, {transform_indices = @transform_7, window_bounds = array<i64: 1, 8, 32>}]} {
    %c0 = arith.constant 0 : index
    %c0_0 = arith.constant 0 : index
    %c0_1 = arith.constant 0 : index
    %0 = vector.load %arg1[%c0, %c0_0, %c0_1] : memref<1x8x32xf32, #tpu.memory_space<vmem>>, vector<1x8x32xf32>
    %1 = vector.shape_cast %0 : vector<1x8x32xf32> to vector<8x32xf32>
    %cst = arith.constant dense<0.000000e+00> : vector<8xf32>
    %2 = vector.multi_reduction <add>, %1, %cst [1] : vector<8x32xf32> to vector<8xf32>
    %3 = vector.shape_cast %2 : vector<8xf32> to vector<8x1xf32>
    %cst_2 = arith.constant 3.200000e+01 : f32
    %4 = vector.broadcast %cst_2 : f32 to vector<8x1xf32>
    %5 = arith.divf %3, %4 : vector<8x1xf32>
    %6 = vector.broadcast %5 : vector<8x1xf32> to vector<8x32xf32>
    %7 = arith.subf %1, %6 : vector<8x32xf32>
    %8 = arith.mulf %7, %7 : vector<8x32xf32>
    %cst_3 = arith.constant dense<0.000000e+00> : vector<8xf32>
    %9 = vector.multi_reduction <add>, %8, %cst_3 [1] : vector<8x32xf32> to vector<8xf32>
    %10 = vector.shape_cast %9 : vector<8xf32> to vector<8x1xf32>
    %cst_4 = arith.constant 3.200000e+01 : f32
    %11 = vector.broadcast %cst_4 : f32 to vector<8x1xf32>
    %12 = arith.divf %10, %11 : vector<8x1xf32>
    %cst_5 = arith.constant 9.99999974E-6 : f32
    %13 = vector.broadcast %cst_5 : f32 to vector<8x1xf32>
    %14 = arith.addf %12, %13 : vector<8x1xf32>
    %15 = math.rsqrt %14 : vector<8x1xf32>
    %16 = vector.broadcast %15 : vector<8x1xf32> to vector<8x32xf32>
    %17 = arith.mulf %7, %16 : vector<8x32xf32>
    %c0_6 = arith.constant 0 : index
    %c0_7 = arith.constant 0 : index
    %18 = vector.load %arg2[%c0_6, %c0_7] : memref<32x96xf32, #tpu.memory_space<vmem>>, vector<32x96xf32>
    %cst_8 = arith.constant dense<0.000000e+00> : vector<8x96xf32>
    %19 = tpu.matmul %17, %18, %cst_8 {dimension_numbers = #tpu.dot_dimension_numbers<[1], [0], [0], [1], [0, 0, 1, 1], [], []>} : vector<8x32xf32>, vector<32x96xf32>, vector<8x96xf32> -> vector<8x96xf32>
    %c0_9 = arith.constant 0 : index
    %c0_10 = arith.constant 0 : index
    %20 = vector.load %arg3[%c0_9, %c0_10] : memref<1x96xf32, #tpu.memory_space<vmem>>, vector<1x96xf32>
    %21 = vector.broadcast %20 : vector<1x96xf32> to vector<8x96xf32>
    %22 = arith.addf %19, %21 : vector<8x96xf32>
    %23 = vector.extract_strided_slice %22 {offsets = [0, 0], sizes = [8, 32], strides = [1, 1]} : vector<8x96xf32> to vector<8x32xf32>
    %24 = vector.extract_strided_slice %22 {offsets = [0, 32], sizes = [8, 32], strides = [1, 1]} : vector<8x96xf32> to vector<8x32xf32>
    %25 = vector.extract_strided_slice %22 {offsets = [0, 64], sizes = [8, 32], strides = [1, 1]} : vector<8x96xf32> to vector<8x32xf32>
    %26 = vector.extract_strided_slice %23 {offsets = [0, 0], sizes = [8, 8], strides = [1, 1]} : vector<8x32xf32> to vector<8x8xf32>
    %27 = vector.extract_strided_slice %24 {offsets = [0, 0], sizes = [8, 8], strides = [1, 1]} : vector<8x32xf32> to vector<8x8xf32>
    %28 = vector.extract_strided_slice %25 {offsets = [0, 0], sizes = [8, 8], strides = [1, 1]} : vector<8x32xf32> to vector<8x8xf32>
    %cst_11 = arith.constant dense<0.000000e+00> : vector<8x8xf32>
    %29 = tpu.matmul %26, %27, %cst_11 {dimension_numbers = #tpu.dot_dimension_numbers<[1], [1], [0], [0], [0, 0, 1, 0], [], []>} : vector<8x8xf32>, vector<8x8xf32>, vector<8x8xf32> -> vector<8x8xf32>
    %cst_12 = arith.constant dense<0xFF800000> : vector<8xf32>
    %30 = vector.multi_reduction <maximumf>, %29, %cst_12 [1] : vector<8x8xf32> to vector<8xf32>
    %31 = vector.shape_cast %30 : vector<8xf32> to vector<8x1xf32>
    %32 = vector.broadcast %31 : vector<8x1xf32> to vector<8x8xf32>
    %33 = arith.subf %29, %32 : vector<8x8xf32>
    %34 = math.exp %33 : vector<8x8xf32>
    %cst_13 = arith.constant dense<0.000000e+00> : vector<8x8xf32>
    %35 = tpu.matmul %34, %28, %cst_13 {dimension_numbers = #tpu.dot_dimension_numbers<[1], [0], [0], [1], [0, 0, 1, 1], [], []>} : vector<8x8xf32>, vector<8x8xf32>, vector<8x8xf32> -> vector<8x8xf32>
    %cst_14 = arith.constant dense<0.000000e+00> : vector<8xf32>
    %36 = vector.multi_reduction <add>, %34, %cst_14 [1] : vector<8x8xf32> to vector<8xf32>
    %37 = vector.shape_cast %36 : vector<8xf32> to vector<8x1xf32>
    %38 = tpu.reciprocal %37 : vector<8x1xf32> -> vector<8x1xf32>
    %39 = vector.broadcast %38 : vector<8x1xf32> to vector<8x8xf32>
    %40 = arith.mulf %35, %39 : vector<8x8xf32>
    %41 = vector.extract_strided_slice %23 {offsets = [0, 8], sizes = [8, 8], strides = [1, 1]} : vector<8x32xf32> to vector<8x8xf32>
    %42 = vector.extract_strided_slice %24 {offsets = [0, 8], sizes = [8, 8], strides = [1, 1]} : vector<8x32xf32> to vector<8x8xf32>
    %43 = vector.extract_strided_slice %25 {offsets = [0, 8], sizes = [8, 8], strides = [1, 1]} : vector<8x32xf32> to vector<8x8xf32>
    %cst_15 = arith.constant dense<0.000000e+00> : vector<8x8xf32>
    %44 = tpu.matmul %41, %42, %cst_15 {dimension_numbers = #tpu.dot_dimension_numbers<[1], [1], [0], [0], [0, 0, 1, 0], [], []>} : vector<8x8xf32>, vector<8x8xf32>, vector<8x8xf32> -> vector<8x8xf32>
    %cst_16 = arith.constant dense<0xFF800000> : vector<8xf32>
    %45 = vector.multi_reduction <maximumf>, %44, %cst_16 [1] : vector<8x8xf32> to vector<8xf32>
    %46 = vector.shape_cast %45 : vector<8xf32> to vector<8x1xf32>
    %47 = vector.broadcast %46 : vector<8x1xf32> to vector<8x8xf32>
    %48 = arith.subf %44, %47 : vector<8x8xf32>
    %49 = math.exp %48 : vector<8x8xf32>
    %cst_17 = arith.constant dense<0.000000e+00> : vector<8x8xf32>
    %50 = tpu.matmul %49, %43, %cst_17 {dimension_numbers = #tpu.dot_dimension_numbers<[1], [0], [0], [1], [0, 0, 1, 1], [], []>} : vector<8x8xf32>, vector<8x8xf32>, vector<8x8xf32> -> vector<8x8xf32>
    %cst_18 = arith.constant dense<0.000000e+00> : vector<8xf32>
    %51 = vector.multi_reduction <add>, %49, %cst_18 [1] : vector<8x8xf32> to vector<8xf32>
    %52 = vector.shape_cast %51 : vector<8xf32> to vector<8x1xf32>
    %53 = tpu.reciprocal %52 : vector<8x1xf32> -> vector<8x1xf32>
    %54 = vector.broadcast %53 : vector<8x1xf32> to vector<8x8xf32>
    %55 = arith.mulf %50, %54 : vector<8x8xf32>
    %56 = vector.extract_strided_slice %23 {offsets = [0, 16], sizes = [8, 8], strides = [1, 1]} : vector<8x32xf32> to vector<8x8xf32>
    %57 = vector.extract_strided_slice %24 {offsets = [0, 16], sizes = [8, 8], strides = [1, 1]} : vector<8x32xf32> to vector<8x8xf32>
    %58 = vector.extract_strided_slice %25 {offsets = [0, 16], sizes = [8, 8], strides = [1, 1]} : vector<8x32xf32> to vector<8x8xf32>
    %cst_19 = arith.constant dense<0.000000e+00> : vector<8x8xf32>
    %59 = tpu.matmul %56, %57, %cst_19 {dimension_numbers = #tpu.dot_dimension_numbers<[1], [1], [0], [0], [0, 0, 1, 0], [], []>} : vector<8x8xf32>, vector<8x8xf32>, vector<8x8xf32> -> vector<8x8xf32>
    %cst_20 = arith.constant dense<0xFF800000> : vector<8xf32>
    %60 = vector.multi_reduction <maximumf>, %59, %cst_20 [1] : vector<8x8xf32> to vector<8xf32>
    %61 = vector.shape_cast %60 : vector<8xf32> to vector<8x1xf32>
    %62 = vector.broadcast %61 : vector<8x1xf32> to vector<8x8xf32>
    %63 = arith.subf %59, %62 : vector<8x8xf32>
    %64 = math.exp %63 : vector<8x8xf32>
    %cst_21 = arith.constant dense<0.000000e+00> : vector<8x8xf32>
    %65 = tpu.matmul %64, %58, %cst_21 {dimension_numbers = #tpu.dot_dimension_numbers<[1], [0], [0], [1], [0, 0, 1, 1], [], []>} : vector<8x8xf32>, vector<8x8xf32>, vector<8x8xf32> -> vector<8x8xf32>
    %cst_22 = arith.constant dense<0.000000e+00> : vector<8xf32>
    %66 = vector.multi_reduction <add>, %64, %cst_22 [1] : vector<8x8xf32> to vector<8xf32>
    %67 = vector.shape_cast %66 : vector<8xf32> to vector<8x1xf32>
    %68 = tpu.reciprocal %67 : vector<8x1xf32> -> vector<8x1xf32>
    %69 = vector.broadcast %68 : vector<8x1xf32> to vector<8x8xf32>
    %70 = arith.mulf %65, %69 : vector<8x8xf32>
    %71 = vector.extract_strided_slice %23 {offsets = [0, 24], sizes = [8, 8], strides = [1, 1]} : vector<8x32xf32> to vector<8x8xf32>
    %72 = vector.extract_strided_slice %24 {offsets = [0, 24], sizes = [8, 8], strides = [1, 1]} : vector<8x32xf32> to vector<8x8xf32>
    %73 = vector.extract_strided_slice %25 {offsets = [0, 24], sizes = [8, 8], strides = [1, 1]} : vector<8x32xf32> to vector<8x8xf32>
    %cst_23 = arith.constant dense<0.000000e+00> : vector<8x8xf32>
    %74 = tpu.matmul %71, %72, %cst_23 {dimension_numbers = #tpu.dot_dimension_numbers<[1], [1], [0], [0], [0, 0, 1, 0], [], []>} : vector<8x8xf32>, vector<8x8xf32>, vector<8x8xf32> -> vector<8x8xf32>
    %cst_24 = arith.constant dense<0xFF800000> : vector<8xf32>
    %75 = vector.multi_reduction <maximumf>, %74, %cst_24 [1] : vector<8x8xf32> to vector<8xf32>
    %76 = vector.shape_cast %75 : vector<8xf32> to vector<8x1xf32>
    %77 = vector.broadcast %76 : vector<8x1xf32> to vector<8x8xf32>
    %78 = arith.subf %74, %77 : vector<8x8xf32>
    %79 = math.exp %78 : vector<8x8xf32>
    %cst_25 = arith.constant dense<0.000000e+00> : vector<8x8xf32>
    %80 = tpu.matmul %79, %73, %cst_25 {dimension_numbers = #tpu.dot_dimension_numbers<[1], [0], [0], [1], [0, 0, 1, 1], [], []>} : vector<8x8xf32>, vector<8x8xf32>, vector<8x8xf32> -> vector<8x8xf32>
    %cst_26 = arith.constant dense<0.000000e+00> : vector<8xf32>
    %81 = vector.multi_reduction <add>, %79, %cst_26 [1] : vector<8x8xf32> to vector<8xf32>
    %82 = vector.shape_cast %81 : vector<8xf32> to vector<8x1xf32>
    %83 = tpu.reciprocal %82 : vector<8x1xf32> -> vector<8x1xf32>
    %84 = vector.broadcast %83 : vector<8x1xf32> to vector<8x8xf32>
    %85 = arith.mulf %80, %84 : vector<8x8xf32>
    %86 = tpu.concatenate %40, %55, %70, %85 in 1 : vector<8x8xf32>, vector<8x8xf32>, vector<8x8xf32>, vector<8x8xf32> -> vector<8x32xf32>
    %87 = arith.addf %1, %86 : vector<8x32xf32>
    %cst_27 = arith.constant dense<0.000000e+00> : vector<8xf32>
    %88 = vector.multi_reduction <add>, %87, %cst_27 [1] : vector<8x32xf32> to vector<8xf32>
    %89 = vector.shape_cast %88 : vector<8xf32> to vector<8x1xf32>
    %cst_28 = arith.constant 3.200000e+01 : f32
    %90 = vector.broadcast %cst_28 : f32 to vector<8x1xf32>
    %91 = arith.divf %89, %90 : vector<8x1xf32>
    %92 = vector.broadcast %91 : vector<8x1xf32> to vector<8x32xf32>
    %93 = arith.subf %87, %92 : vector<8x32xf32>
    %94 = arith.mulf %93, %93 : vector<8x32xf32>
    %cst_29 = arith.constant dense<0.000000e+00> : vector<8xf32>
    %95 = vector.multi_reduction <add>, %94, %cst_29 [1] : vector<8x32xf32> to vector<8xf32>
    %96 = vector.shape_cast %95 : vector<8xf32> to vector<8x1xf32>
    %cst_30 = arith.constant 3.200000e+01 : f32
    %97 = vector.broadcast %cst_30 : f32 to vector<8x1xf32>
    %98 = arith.divf %96, %97 : vector<8x1xf32>
    %cst_31 = arith.constant 9.99999974E-6 : f32
    %99 = vector.broadcast %cst_31 : f32 to vector<8x1xf32>
    %100 = arith.addf %98, %99 : vector<8x1xf32>
    %101 = math.rsqrt %100 : vector<8x1xf32>
    %102 = vector.broadcast %101 : vector<8x1xf32> to vector<8x32xf32>
    %103 = arith.mulf %93, %102 : vector<8x32xf32>
    %c0_32 = arith.constant 0 : index
    %c0_33 = arith.constant 0 : index
    %104 = vector.load %arg4[%c0_32, %c0_33] : memref<32x64xf32, #tpu.memory_space<vmem>>, vector<32x64xf32>
    %cst_34 = arith.constant dense<0.000000e+00> : vector<8x64xf32>
    %105 = tpu.matmul %103, %104, %cst_34 {dimension_numbers = #tpu.dot_dimension_numbers<[1], [0], [0], [1], [0, 0, 1, 1], [], []>} : vector<8x32xf32>, vector<32x64xf32>, vector<8x64xf32> -> vector<8x64xf32>
    %c0_35 = arith.constant 0 : index
    %c0_36 = arith.constant 0 : index
    %106 = vector.load %arg5[%c0_35, %c0_36] : memref<1x64xf32, #tpu.memory_space<vmem>>, vector<1x64xf32>
    %107 = vector.broadcast %106 : vector<1x64xf32> to vector<8x64xf32>
    %108 = arith.addf %105, %107 : vector<8x64xf32>
    %cst_37 = arith.constant 5.000000e-01 : f32
    %109 = vector.broadcast %cst_37 : f32 to vector<8x64xf32>
    %110 = arith.mulf %109, %108 : vector<8x64xf32>
    %cst_38 = arith.constant 0.707106769 : f32
    %111 = vector.broadcast %cst_38 : f32 to vector<8x64xf32>
    %112 = arith.mulf %108, %111 : vector<8x64xf32>
    %113 = math.absf %112 : vector<8x64xf32>
    %cst_39 = arith.constant 0.327591091 : f32
    %114 = vector.broadcast %cst_39 : f32 to vector<8x64xf32>
    %115 = arith.mulf %114, %113 : vector<8x64xf32>
    %cst_40 = arith.constant 1.000000e+00 : f32
    %116 = vector.broadcast %cst_40 : f32 to vector<8x64xf32>
    %117 = arith.addf %116, %115 : vector<8x64xf32>
    %cst_41 = arith.constant 1.000000e+00 : f32
    %118 = vector.broadcast %cst_41 : f32 to vector<8x64xf32>
    %119 = arith.divf %118, %117 : vector<8x64xf32>
    %cst_42 = arith.constant 1.06140542 : f32
    %120 = vector.broadcast %cst_42 : f32 to vector<8x64xf32>
    %121 = arith.mulf %120, %119 : vector<8x64xf32>
    %cst_43 = arith.constant -1.45315206 : f32
    %122 = vector.broadcast %cst_43 : f32 to vector<8x64xf32>
    %123 = arith.addf %121, %122 : vector<8x64xf32>
    %124 = arith.mulf %123, %119 : vector<8x64xf32>
    %cst_44 = arith.constant 1.42141378 : f32
    %125 = vector.broadcast %cst_44 : f32 to vector<8x64xf32>
    %126 = arith.addf %124, %125 : vector<8x64xf32>
    %127 = arith.mulf %126, %119 : vector<8x64xf32>
    %cst_45 = arith.constant -0.284496725 : f32
    %128 = vector.broadcast %cst_45 : f32 to vector<8x64xf32>
    %129 = arith.addf %127, %128 : vector<8x64xf32>
    %130 = arith.mulf %129, %119 : vector<8x64xf32>
    %cst_46 = arith.constant 0.254829586 : f32
    %131 = vector.broadcast %cst_46 : f32 to vector<8x64xf32>
    %132 = arith.addf %130, %131 : vector<8x64xf32>
    %133 = arith.mulf %132, %119 : vector<8x64xf32>
    %cst_47 = arith.constant 0.000000e+00 : f32
    %134 = vector.broadcast %cst_47 : f32 to vector<8x64xf32>
    %135 = arith.subf %134, %113 : vector<8x64xf32>
    %136 = arith.mulf %135, %113 : vector<8x64xf32>
    %137 = math.exp %136 : vector<8x64xf32>
    %138 = arith.mulf %133, %137 : vector<8x64xf32>
    %cst_48 = arith.constant 1.000000e+00 : f32
    %139 = vector.broadcast %cst_48 : f32 to vector<8x64xf32>
    %140 = arith.subf %139, %138 : vector<8x64xf32>
    %cst_49 = arith.constant 0.000000e+00 : f32
    %141 = vector.broadcast %cst_49 : f32 to vector<8x64xf32>
    %142 = arith.cmpf oge, %112, %141 : vector<8x64xf32>
    %cst_50 = arith.constant 0.000000e+00 : f32
    %143 = vector.broadcast %cst_50 : f32 to vector<8x64xf32>
    %144 = arith.subf %143, %140 : vector<8x64xf32>
    %145 = arith.select %142, %140, %144 : vector<8x64xi1>, vector<8x64xf32>
    %cst_51 = arith.constant 1.000000e+00 : f32
    %146 = vector.broadcast %cst_51 : f32 to vector<8x64xf32>
    %147 = arith.addf %146, %145 : vector<8x64xf32>
    %148 = arith.mulf %110, %147 : vector<8x64xf32>
    %c0_52 = arith.constant 0 : index
    %c0_53 = arith.constant 0 : index
    %149 = vector.load %arg6[%c0_52, %c0_53] : memref<64x32xf32, #tpu.memory_space<vmem>>, vector<64x32xf32>
    %cst_54 = arith.constant dense<0.000000e+00> : vector<8x32xf32>
    %150 = tpu.matmul %148, %149, %cst_54 {dimension_numbers = #tpu.dot_dimension_numbers<[1], [0], [0], [1], [0, 0, 1, 1], [], []>} : vector<8x64xf32>, vector<64x32xf32>, vector<8x32xf32> -> vector<8x32xf32>
    %c0_55 = arith.constant 0 : index
    %c0_56 = arith.constant 0 : index
    %151 = vector.load %arg7[%c0_55, %c0_56] : memref<1x32xf32, #tpu.memory_space<vmem>>, vector<1x32xf32>
    %152 = vector.broadcast %151 : vector<1x32xf32> to vector<8x32xf32>
    %153 = arith.addf %150, %152 : vector<8x32xf32>
    %154 = arith.addf %87, %153 : vector<8x32xf32>
    %c0_57 = arith.constant 0 : index
    %c0_58 = arith.constant 0 : index
    %c0_59 = arith.constant 0 : index
    %155 = vector.load %arg8[%c0_57, %c0_58, %c0_59] : memref<1x8x32xf32, #tpu.memory_space<vmem>>, vector<1x8x32xf32>
    %156 = vector.shape_cast %155 : vector<1x8x32xf32> to vector<8x32xf32>
    %157 = vector.shape_cast %154 : vector<8x32xf32> to vector<1x8x32xf32>
    tpu.vector_store %arg8[%c0_57, %c0_58, %c0_59], %157 {strides = array<i32>} : memref<1x8x32xf32, #tpu.memory_space<vmem>>, vector<1x8x32xf32>,
    return
  }
  func.func @transform_0(%arg0: i32) -> (i32, i32, i32) {
    %c0_i32 = arith.constant 0 : i32
    %c0_i32_0 = arith.constant 0 : i32
    %c0_i32_1 = arith.constant 0 : i32
    return %arg0, %c0_i32, %c0_i32_0 : i32, i32, i32
  }
  func.func @transform_1(%arg0: i32) -> (i32, i32) {
    %c0_i32 = arith.constant 0 : i32
    %c0_i32_0 = arith.constant 0 : i32
    %c0_i32_1 = arith.constant 0 : i32
    return %c0_i32, %c0_i32_0 : i32, i32
  }
  func.func @transform_2(%arg0: i32) -> (i32, i32) {
    %c0_i32 = arith.constant 0 : i32
    %c0_i32_0 = arith.constant 0 : i32
    %c0_i32_1 = arith.constant 0 : i32
    return %c0_i32, %c0_i32_0 : i32, i32
  }
  func.func @transform_3(%arg0: i32) -> (i32, i32) {
    %c0_i32 = arith.constant 0 : i32
    %c0_i32_0 = arith.constant 0 : i32
    %c0_i32_1 = arith.constant 0 : i32
    return %c0_i32, %c0_i32_0 : i32, i32
  }
  func.func @transform_4(%arg0: i32) -> (i32, i32) {
    %c0_i32 = arith.constant 0 : i32
    %c0_i32_0 = arith.constant 0 : i32
    %c0_i32_1 = arith.constant 0 : i32
    return %c0_i32, %c0_i32_0 : i32, i32
  }
  func.func @transform_5(%arg0: i32) -> (i32, i32) {
    %c0_i32 = arith.constant 0 : i32
    %c0_i32_0 = arith.constant 0 : i32
    %c0_i32_1 = arith.constant 0 : i32
    return %c0_i32, %c0_i32_0 : i32, i32
  }
  func.func @transform_6(%arg0: i32) -> (i32, i32) {
    %c0_i32 = arith.constant 0 : i32
    %c0_i32_0 = arith.constant 0 : i32
    %c0_i32_1 = arith.constant 0 : i32
    return %c0_i32, %c0_i32_0 : i32, i32
  }
  func.func @transform_7(%arg0: i32) -> (i32, i32, i32) {
    %c0_i32 = arith.constant 0 : i32
    %c0_i32_0 = arith.constant 0 : i32
    %c0_i32_1 = arith.constant 0 : i32
    return %arg0, %c0_i32, %c0_i32_0 : i32, i32, i32
  }
}

</mosaic_0001>

<bundles_post_ra>
// kernel: tpu_custom_call.1
= control target key start
LH: loop header
LB: loop body
LE: loop exit
PB: predicated region body
PF: predicated region fallthrough
CT: control target
= control target key end

     0   :  { %12 = vsyncpa [#allocation3], 0  ;;  %s1924_s0 = inlined_call_operand.vmem [shape: f32[2,8,32], index: 0, kind: input, shape index: {}]   ;;  %s1925_s1 = inlined_call_operand.vmem [shape: f32[32,96], index: 1, kind: input, shape index: {}]   ;;  %s1926_s2 = inlined_call_operand.vmem [shape: f32[1,96], index: 2, kind: input, shape index: {}]   ;;  %s1927_s3 = inlined_call_operand.vmem [shape: f32[32,64], index: 3, kind: input, shape index: {}]   ;;  %s1928_s4 = inlined_call_operand.vmem [shape: f32[1,64], index: 4, kind: input, shape index: {}]   ;;  %s1929_s5 = inlined_call_operand.vmem [shape: f32[64,32], index: 5, kind: input, shape index: {}]   ;;  %s1930_s6 = inlined_call_operand.vmem [shape: f32[1,32], index: 6, kind: input, shape index: {}]   ;;  %s1931_s7 = inlined_call_operand.hbm [shape: f32[2,8,32], index: 7, kind: output, shape index: {}]  }
   0x1   :  { %14 = vsyncpa [#allocation3 + $0x1], 0  ;;  %s1682_s24 = smov 0   ;;  %s1684_s25 = smov 0  }
   0x2   :  { %s1686_s26 = smov 0   ;;  %s1688_s27 = smov 0  }
   0x3 LB: > { %s1703_s28 = sadd.s32 4294967295, %s1623_s27   ;;  %s1340_s29 = sadd.s32 4294967294, %s1623_s27   ;;  %s1623_s27 = sphi %s1688_s27, %s1937_s27   ;;  %s1619_s26 = sphi %s1686_s26, %s1936_s26   ;;  %s1615_s25 = sphi %s1684_s25, %s1935_s25   ;;  %s1611_s24 = sphi %s1682_s24, %s1934_s24  }
   0x4   : > { %s1707_s30 = sadd.s32 1, %s1623_s27   ;;  %s179_s8 = sadd.s32 1, %s1619_s26 }
   0x5   : > { %s176_s9 = ssub.s32 %s1623_s27, %s1707_s30  ;;  %p189_p0 = scmp.ne.s32.totalorder %s1619_s26, %s1615_s25 }
   0x6   : > { %p177_p1 = scmp.eq.s32.totalorder %s176_s9, 0  ;;  %p190_p2 = scmp.eq.s32.totalorder %s1703_s28, 1 }
   0x7   : > { %p195_p3 = scmp.ne.s32.totalorder %s1615_s25, %s1611_s24  ;;  %p196_p4 = scmp.eq.s32.totalorder %s1340_s29, 1 }
   0x8   : > { %s1718_s10 = scalar_select %p177_p1, %s1619_s26, %s179_s8  }
   0x9   : > { %p1720_p5 = por %p190_p2, %p189_p0  ;;  %p1724_p6 = por %p196_p4, %p195_p3 }
   0xa   : > { %p1343_p7 = scmp.ge.s32.totalorder %s1623_s27, 1  ;;  %p239_p8 = scmp.lt.s32.totalorder %s1623_s27, 3 }
   0xc   : > { %p240_p9 = pnand %p1343_p7, %p239_p8 }
   0xd   : > { %p270_p10 = scmp.lt.s32.totalorder (!%p240_p9), %s1703_s28, 1  ;;  %s1628_s15 = smov (!%p240_p9), 96  }
   0xe   : > { %243 = sbr.rel (%p240_p9) target bundleno = 2081 (0x821), region = 48  ;;  %s1629_s16 = smov (!%p240_p9), 88  }
   0xf   : > { %s1631_s18 = smov (!%p240_p9), 112   ;;  %s1632_s19 = smov (!%p240_p9), 72  }
  0x10   : > { %s1633_s20 = smov (!%p240_p9), 104   ;;  %s1634_s21 = smov (!%p240_p9), 64  }
  0x11   : > { %s1635_s22 = smov (!%p240_p9), 48   ;;  %s1636_s23 = smov (!%p240_p9), 40  }
  0x12   : > { %s1637_s29 = smov (!%p240_p9), 56   ;;  %s1638_s8 = smov (!%p240_p9), 8  }
  0x13   : > { %s271_s13 = scalar_select %p270_p10, %s1703_s28, 1  ;;  %vm275_vm0 = vcmask 261120   ;;  %v293_v7 = vld [vmem:[%s1925_s1 + $0x18] sm:$0xff]  ;;  %v1625_v8 = vmov 0.0   ;;  %v292_v9 = vld [vmem:[%s1925_s1 + $0x10] sm:$0xff]  ;;  %vm1626_vm1 = vmmov 0  }
  0x14   : > { %1403 = vmatprep.subr.mxu0 %v1625_v8  ;;  %1411 = vmatprep.mubr.msk.f32.mxu0 %vm1626_vm1, %v1625_v8  ;;  %v291_v10 = vld [vmem:[%s1925_s1 + $0x8] sm:$0xff]  ;;  %v290_v11 = vld [vmem:[%s1925_s1] sm:$0xff]  ;;  %vm377_vm2 = vcmask 64512   ;;  %s1639_s9 = smov 16   ;;  %vm1047_vm3 = vcmask 130048   ;;  %vm1049_vm4 = vcmask 195584  }
  0x15   : > { %s1345_s14 = sshll.u32 %s271_s13, 3  ;;  %1404 = vmatpush3.msra.mxu0 %v293_v7  ;;  %1419 = vmatprep.subr.mxu1 %v1625_v8  ;;  %v1346_v17 = vld [vmem:[%s1926_s2] ss:$0 sm:$0xff]  ;;  %s1640_s13 = smov 24   ;;  %vm1191_vm6 = vcmask 523264  }
  0x16   : > { %s273_s17 = scalar_lea.vmem %s1924_s0, %s1345_s14  ;;  %1405 = vmatprep.subr.mxu0 %v1625_v8  ;;  %1421 = vmatprep.mubr.msk.f32.mxu1 %vm1626_vm1, %v1625_v8  ;;  %s1627_s14 = smov 120  }
  0x17   : > { %v1735_v0 = vld [vmem:[%s273_s17] sm:$0xff]  ;;  %1406 = vmatpush3.msra.mxu0 %v292_v9  ;;  %s1630_s17 = smov 80  }
  0x18   : > { %v276_v1 = vsel %vm275_vm0, %v1735_v0, 0.0  ;;  %1407 = vmatprep.subr.mxu0 %v1625_v8 }
  0x19   : > { %277 = vadd.xlane.f32.xlu0 %v276_v1  ;;  %1408 = vmatpush3.msra.mxu0 %v291_v10 }
  0x1a   : > { %1409 = vmatprep.subr.mxu0 %v1625_v8 }
  0x1b   : > { %1410 = vmatpush3.msra.mxu0 %v290_v11 }
  0x1c   : > { %1414 = vmatprep.subr.mxu0 %v1625_v8 }
  0xa2   : > { %v278_v2 = vpop.xlane.xlu0 %277 }
  0xa3   : > { %v280_v3 = vmul.f32 0.03125, %v278_v2 }
  0xa5   : > { %v281_v4 = vsub.f32 %v1735_v0, %v280_v3 }
  0xa7   : > { %v282_v5 = vmul.f32 %v281_v4, %v281_v4 }
  0xa9   : > { %v283_v6 = vsel %vm275_vm0, %v282_v5, 0.0 }
  0xaa   : > { %284 = vadd.xlane.f32.xlu0 %v283_v6 }
 0x133   : > { %v285_v12 = vpop.xlane.xlu0 %284 }
 0x134   : > { %v286_v13 = vmul.f32 0.03125, %v285_v12 }
 0x136   : > { %v287_v14 = vadd.f32 1e-05, %v286_v13 }
 0x138   : > { %1539 = vrsqrt.f32 %v287_v14 }
 0x145   : > { %v1540_v15 = vpop.eup %1539 }
 0x146   : > { %v289_v16 = vmul.f32 %v1540_v15, %v281_v4 }
 0x148   : > { %1412 = vmatmul.mubr.msk.f32.vlgmr.msra.gmra.mxu0 %vm275_vm0, %v289_v16 }
 0x149   : > { %1416 = vmatprep.mubr.msk.f32.mxu0 %vm1626_vm1, %v1625_v8 }
 0x208   : > { %v370_v18 = vpop.f32.mrf.mxu0 }
 0x209   : > { %v1769_v19 = vadd.f32 %v1346_v17, %v370_v18 }
 0x20a   : > { %v1413_v20 = vpop.f32.mrf.mxu0 }
 0x20b   : > { %539 = vrot.lane.b32.xlu0 %v1769_v19, %s1627_s14  ;;  %375 = vrot.lane.b32.xlu1 %v1769_v19, %s1628_s15 }
 0x20f   : > { %541 = vrot.lane.b32.xlu1 %v1769_v19, %s1629_s16  ;;  %s1365_s16 = sshll.u32 %s1703_s28, 7  ;;  %s1641_s28 = smov [#allocation2]  }
 0x213   : > { %706 = vrot.lane.b32.xlu1 %v1769_v19, %s1630_s17 }
 0x217   : > { %704 = vrot.lane.b32.xlu1 %v1769_v19, %s1631_s18 }
 0x21b   : > { %871 = vrot.lane.b32.xlu1 %v1769_v19, %s1632_s19 }
 0x21f   : > { %869 = vrot.lane.b32.xlu1 %v1769_v19, %s1633_s20 }
 0x223   : > { %458 = vrot.lane.b32.xlu1 %v1769_v19, %s1634_s21  ;;  %s1279_s21 = scalar_lea.hbm %s1931_s7, %s1365_s16 }
 0x27d   : > { %v376_v21 = vpop.permute.xlu1 %375  ;;  %v540_v23 = vpop.permute.xlu0 %539 }
 0x27e   : > { %1415 = vmatpush3.xpose.msk.msra.mxu0 %vm377_vm2, %v376_v21 }
 0x27f   : > { %1424 = vmatprep.subr.mxu0 %v1625_v8 }
 0x281   : > { %1417 = vmatmul.mubr.msk.f32.vlgmr.msra.gmra.mxu0 %vm377_vm2, %v1769_v19  ;;  %v542_v22 = vpop.permute.xlu1 %541 }
 0x282   : > { %1425 = vmatpush3.xpose.msk.msra.mxu0 %vm377_vm2, %v542_v22  ;;  %1426 = vmatprep.mubr.msk.f32.mxu0 %vm1626_vm1, %v1625_v8 }
 0x283   : > { %1434 = vmatprep.subr.mxu0 %v1625_v8 }
 0x285   : > { %1427 = vmatmul.mubr.msk.f32.vlgmr.msra.gmra.mxu0 %vm377_vm2, %v540_v23  ;;  %v707_v24 = vpop.permute.xlu1 %706 }
 0x286   : > { %1435 = vmatpush3.xpose.msk.msra.mxu0 %vm377_vm2, %v707_v24  ;;  %1436 = vmatprep.mubr.msk.f32.mxu0 %vm1626_vm1, %v1625_v8 }
 0x287   : > { %1444 = vmatprep.subr.mxu0 %v1625_v8 }
 0x289   : > { %v705_v25 = vpop.permute.xlu1 %704 }
 0x28a   : > { %1437 = vmatmul.mubr.msk.f32.vlgmr.msra.gmra.mxu0 %vm377_vm2, %v705_v25 }
 0x28b   : > { %1446 = vmatprep.mubr.msk.f32.mxu0 %vm1626_vm1, %v1625_v8 }
 0x28d   : > { %v872_v26 = vpop.permute.xlu1 %871 }
 0x28e   : > { %1445 = vmatpush3.xpose.msk.msra.mxu0 %vm377_vm2, %v872_v26 }
 0x28f   : > { %1454 = vmatprep.subr.mxu0 %v1625_v8 }
 0x291   : > { %v870_v27 = vpop.permute.xlu1 %869 }
 0x292   : > { %1447 = vmatmul.mubr.msk.f32.vlgmr.msra.gmra.mxu0 %vm377_vm2, %v870_v27 }
 0x293   : > { %1462 = vmatprep.mubr.msk.f32.mxu0 %vm1626_vm1, %v1625_v8 }
 0x295   : > { %v459_v28 = vpop.permute.xlu1 %458 }
 0x296   : > { %1420 = vmatpush3.msra.mxu1 %v459_v28 }
 0x297   : > { %1429 = vmatprep.subr.mxu1 %v1625_v8 }
 0x341   : > { %v448_v29 = vpop.f32.mrf.mxu0 }
 0x342   : > { %v452_v30 = vsel %vm377_vm2, %v448_v29, -inf }
 0x343   : > { %453 = vmax.xlane.f32.xlu1 %v452_v30  ;;  %v1418_v31 = vpop.f32.mrf.mxu0 }
 0x345   : > { %v613_v32 = vpop.f32.mrf.mxu0 }
 0x346   : > { %v617_v33 = vsel %vm377_vm2, %v613_v32, -inf }
 0x347   : > { %618 = vmax.xlane.f32.xlu0 %v617_v33  ;;  %v1428_v34 = vpop.f32.mrf.mxu0 }
 0x34a   : > { %v778_v35 = vpop.f32.mrf.mxu0 }
 0x34b   : > { %v782_v36 = vsel %vm377_vm2, %v778_v35, -inf }
 0x34c   : > { %783 = vmax.xlane.f32.xlu1 %v782_v36  ;;  %v1438_v37 = vpop.f32.mrf.mxu0  ;;  %v1066_v36 = vld [vmem:[%s1927_s3 + $0x8] sm:$0xff] }
 0x34d   : > { %v1065_v37 = vld [vmem:[%s1927_s3] sm:$0xff] }
 0x352   : > { %v943_v38 = vpop.f32.mrf.mxu0 }
 0x353   : > { %v947_v39 = vsel %vm377_vm2, %v943_v38, -inf }
 0x354   : > { %948 = vmax.xlane.f32.xlu0 %v947_v39  ;;  %v1448_v40 = vpop.f32.mrf.mxu0 }
 0x35d   : > { %788 = vrot.lane.b32.xlu1 %v1769_v19, %s1635_s22 }
 0x361   : > { %953 = vrot.lane.b32.xlu1 %v1769_v19, %s1636_s23 }
 0x36a   : > { %623 = vrot.lane.b32.xlu0 %v1769_v19, %s1637_s29  ;;  %s1567_s29 = sshll.u32 %s1641_s28, 4  ;;  %s1568_s29 = int_to_ptr.vmem [resolvable:$false] %s1567_s29 }
 0x3cc   : > { %v454_v41 = vpop.xlane.xlu1 %453 }
 0x3cd   : > { %v455_v42 = vsub.f32 %v448_v29, %v454_v41 }
 0x3cf   : > { %v456_v43 = vmul.f32 1.442695, %v455_v42 }
 0x3d0   : > { %v619_v44 = vpop.xlane.xlu0 %618 }
 0x3d1   : > { %1541 = vpow2.f32 %v456_v43  ;;  %v620_v45 = vsub.f32 %v613_v32, %v619_v44  ;;  %v1183_v43 = vld [vmem:[%s1929_s5 + $0x38] sm:$0xff]  ;;  %v1182_v44 = vld [vmem:[%s1929_s5 + $0x30] sm:$0xff] }
 0x3d3   : > { %v621_v46 = vmul.f32 1.442695, %v620_v45  ;;  %v1181_v45 = vld [vmem:[%s1929_s5 + $0x28] sm:$0xff] }
 0x3d5   : > { %1543 = vpow2.f32 %v621_v46  ;;  %v784_v47 = vpop.xlane.xlu1 %783  ;;  %v1180_v46 = vld [vmem:[%s1929_s5 + $0x20] sm:$0xff] }
 0x3d6   : > { %v785_v48 = vsub.f32 %v778_v35, %v784_v47  ;;  %v1068_v35 = vld [vmem:[%s1927_s3 + $0x18] sm:$0xff] }
 0x3d7   : > { %1455 = vmatpush3.msra.mxu0 %v1068_v35  ;;  %v1179_v47 = vld [vmem:[%s1929_s5 + $0x18] sm:$0xff] }
 0x3d8   : > { %v786_v49 = vmul.f32 1.442695, %v785_v48  ;;  %1456 = vmatprep.subr.mxu0 %v1625_v8  ;;  %v1178_v48 = vld [vmem:[%s1929_s5 + $0x10] sm:$0xff] }
 0x3d9   : > { %v789_v56 = vpop.permute.xlu1 %788 }
 0x3da   : > { %1545 = vpow2.f32 %v786_v49  ;;  %v1177_v49 = vld [vmem:[%s1929_s5 + $0x8] sm:$0xff] }
 0x3dd   : > { %v949_v50 = vpop.xlane.xlu0 %948  ;;  %v954_v59 = vpop.permute.xlu1 %953 }
 0x3de   : > { %v1542_v51 = vpop.eup %1541  ;;  %v950_v52 = vsub.f32 %v943_v38, %v949_v50  ;;  %v1176_v50 = vld [vmem:[%s1929_s5] sm:$0xff] }
 0x3df   : > { %1422 = vmatmul.mubr.msk.f32.vlgmr.msra.gmra.mxu1 %vm377_vm2, %v1542_v51  ;;  %v534_v63 = vsel %vm377_vm2, %v1542_v51, 0.0  ;;  %v1360_v51 = vld [vmem:[%s1928_s4] ss:$0 sm:$0xff] }
 0x3e0   : > { %v951_v53 = vmul.f32 1.442695, %v950_v52  ;;  %1431 = vmatprep.mubr.msk.f32.mxu1 %vm1626_vm1, %v1625_v8 }
 0x3e1   : > { %v624_v54 = vpop.permute.xlu0 %623 }
 0x3e2   : > { %v1544_v55 = vpop.eup %1543  ;;  %1547 = vpow2.f32 %v951_v53  ;;  %1430 = vmatpush3.msra.mxu1 %v624_v54 }
 0x3e3   : > { %1432 = vmatmul.mubr.msk.f32.vlgmr.msra.gmra.mxu1 %vm377_vm2, %v1544_v55  ;;  %1439 = vmatprep.subr.mxu1 %v1625_v8  ;;  %v699_v57 = vsel %vm377_vm2, %v1544_v55, 0.0 }
 0x3e4   : > { %700 = vadd.xlane.f32.xlu0 %v699_v57  ;;  %1440 = vmatpush3.msra.mxu1 %v789_v56 }
 0x3e5   : > { %1441 = vmatprep.mubr.msk.f32.mxu1 %vm1626_vm1, %v1625_v8  ;;  %1449 = vmatprep.subr.mxu1 %v1625_v8 }
 0x3e7   : > { %v1546_v58 = vpop.eup %1545 }
 0x3e8   : > { %1442 = vmatmul.mubr.msk.f32.vlgmr.msra.gmra.mxu1 %vm377_vm2, %v1546_v58  ;;  %v864_v60 = vsel %vm377_vm2, %v1546_v58, 0.0 }
 0x3e9   : > { %1450 = vmatpush3.msra.mxu1 %v954_v59  ;;  %865 = vadd.xlane.f32.xlu1 %v864_v60 }
 0x3ea   : > { %1451 = vmatprep.mubr.msk.f32.mxu1 %vm1626_vm1, %v1625_v8  ;;  %1465 = vmatprep.subr.mxu1 %v1625_v8 }
 0x3ef   : > { %v1548_v61 = vpop.eup %1547 }
 0x3f0   : > { %1452 = vmatmul.mubr.msk.f32.vlgmr.msra.gmra.mxu1 %vm377_vm2, %v1548_v61  ;;  %v1029_v62 = vsel %vm377_vm2, %v1548_v61, 0.0 }
 0x3f1   : > { %1030 = vadd.xlane.f32.xlu0 %v1029_v62  ;;  %1481 = vmatprep.mubr.msk.f32.mxu1 %vm1626_vm1, %v1625_v8 }
 0x3f2   : > { %1466 = vmatpush3.msra.mxu1 %v1183_v43 }
 0x3f3   : > { %1467 = vmatprep.subr.mxu1 %v1625_v8 }
 0x3f4   : > { %1468 = vmatpush3.msra.mxu1 %v1182_v44 }
 0x3f5   : > { %535 = vadd.xlane.f32.xlu0 %v534_v63  ;;  %1469 = vmatprep.subr.mxu1 %v1625_v8 }
 0x3f6   : > { %1470 = vmatpush3.msra.mxu1 %v1181_v45 }
 0x3f7   : > { %1471 = vmatprep.subr.mxu1 %v1625_v8 }
 0x3f8   : > { %1472 = vmatpush3.msra.mxu1 %v1180_v46 }
 0x3f9   : > { %1473 = vmatprep.subr.mxu1 %v1625_v8 }
 0x3fa   : > { %1474 = vmatpush3.msra.mxu1 %v1179_v47 }
 0x3fb   : > { %1475 = vmatprep.subr.mxu1 %v1625_v8 }
 0x3fc   : > { %1476 = vmatpush3.msra.mxu1 %v1178_v48 }
 0x3fd   : > { %1477 = vmatprep.subr.mxu1 %v1625_v8 }
 0x3fe   : > { %1478 = vmatpush3.msra.mxu1 %v1177_v49 }
 0x3ff   : > { %1479 = vmatprep.subr.mxu1 %v1625_v8 }
 0x400   : > { %1480 = vmatpush3.msra.mxu1 %v1176_v50 }
 0x46d   : > { %v701_v1 = vpop.xlane.xlu0 %700 }
 0x46e   : > { %1549 = vrcp.f32 %v701_v1 }
 0x472   : > { %v866_v2 = vpop.xlane.xlu1 %865 }
 0x473   : > { %1551 = vrcp.f32 %v866_v2 }
 0x47a   : > { %v1031_v4 = vpop.xlane.xlu0 %1030 }
 0x47b   : > { %v1550_v6 = vpop.eup %1549  ;;  %1553 = vrcp.f32 %v1031_v4 }
 0x47e   : > { %v536_v19 = vpop.xlane.xlu0 %535 }
 0x47f   : > { %1555 = vrcp.f32 %v536_v19 }
 0x480   : > { %v1552_v11 = vpop.eup %1551 }
 0x488   : > { %v1554_v15 = vpop.eup %1553 }
 0x48c   : > { %v1556_v20 = vpop.eup %1555 }
 0x49f   : > { %v530_v3 = vpop.f32.mrf.mxu1 }
 0x4a0   : > { %v538_v22 = vmul.f32 %v1556_v20, %v530_v3 }
 0x4a1   : > { %v1423_v5 = vpop.f32.mrf.mxu1 }
 0x4a3   : > { %v695_v7 = vpop.f32.mrf.mxu1 }
 0x4a4   : > { %v703_v9 = vmul.f32 %v1550_v6, %v695_v7 }
 0x4a5   : > { %v1433_v10 = vpop.f32.mrf.mxu1 }
 0x4a6   : > { %1035 = vrot.lane.b32.xlu1 %v703_v9, %s1638_s8  ;;  %s1569_s8 = scalar_lea.vmem %s1568_s29, 256 }
 0x4a8   : > { %v860_v12 = vpop.f32.mrf.mxu1 }
 0x4a9   : > { %v868_v13 = vmul.f32 %v1552_v11, %v860_v12 }
 0x4aa   : > { %v1443_v14 = vpop.f32.mrf.mxu1 }
 0x4ab   : > { %1039 = vrot.lane.b32.xlu0 %v868_v13, %s1639_s9  ;;  %s267_s9 = sand.u32 1, %s1615_s25  }
 0x4ac   : > { %s1268_s22 = scalar_lea.sflag [#allocation3], %s267_s9 }
 0x4b0   : > { %v1025_v16 = vpop.f32.mrf.mxu1 }
 0x4b1   : > { %v1033_v17 = vmul.f32 %v1554_v15, %v1025_v16 }
 0x4b2   : > { %v1453_v18 = vpop.f32.mrf.mxu1 }
 0x4b3   : > { %1043 = vrot.lane.b32.xlu1 %v1033_v17, %s1640_s13  ;;  %s1344_s13 = sshll.u32 %s267_s9, 3  ;;  %v1362_v17 = vld [vmem:[%s1930_s6] ss:$0 sm:$0xff] }
 0x4b4   : > { %s269_s17 = scalar_lea.vmem [#allocation2], %s1344_s13 }
 0x4b5   : > { %s1281_s18 = sshll.u32 %s269_s17, 4  ;;  %s1282_s18 = int_to_ptr.vmem [resolvable:$true] %s1281_s18 }
 0x4b6   : > { %s1563_s23 = scalar_lea.vmem %s1282_s18, 128  ;;  %p1570_p0 = scmp.lt.s32.totalorder %s1282_s18, %s1568_s29 }
 0x4b7   : > { %p1564_p11 = scmp.ne.s32.totalorder %s1282_s18, %s1563_s23  ;;  %p1571_p1 = scmp.lt.s32.totalorder %s1569_s8, %s1563_s23 }
 0x4b9   : > { %p1565_p12 = pnand %p1564_p11, %p1720_p5  ;;  %p1572_p2 = por %p1571_p1, %p1570_p0 }
 0x4bb   : > { %p1566_p13 = pneg %p1565_p12 }
 0x4bd   : > { %p1573_p3 = pnand %p1572_p2, %p1566_p13 }
 0x518   : > { %v1036_v21 = vpop.permute.xlu1 %1035 }
 0x519   : > { %v1046_v24 = vsel %vm377_vm2, %v538_v22, %v1036_v21 }
 0x51d   : > { %v1040_v23 = vpop.permute.xlu0 %1039 }
 0x51e   : > { %v1048_v25 = vsel %vm1047_vm3, %v1046_v24, %v1040_v23 }
 0x525   : > { %v1044_v26 = vpop.permute.xlu1 %1043 }
 0x526   : > { %v1050_v27 = vsel %vm1049_vm4, %v1048_v25, %v1044_v26 }
 0x527   : > { %v1829_v28 = vadd.f32 %v1050_v27, %v1735_v0  ;;  %v1067_v0 = vld [vmem:[%s1927_s3 + $0x10] sm:$0xff] }
 0x528   : > { %1457 = vmatpush3.msra.mxu0 %v1067_v0 }
 0x529   : > { %v1052_v29 = vsel %vm275_vm0, %v1829_v28, 0.0  ;;  %1458 = vmatprep.subr.mxu0 %v1625_v8 }
 0x52a   : > { %1053 = vadd.xlane.f32.xlu1 %v1052_v29  ;;  %1459 = vmatpush3.msra.mxu0 %v1066_v36 }
 0x52b   : > { %1460 = vmatprep.subr.mxu0 %v1625_v8 }
 0x52c   : > { %1461 = vmatpush3.msra.mxu0 %v1065_v37 }
 0x5b3   : > { %v1054_v30 = vpop.xlane.xlu1 %1053 }
 0x5b4   : > { %v1055_v31 = vmul.f32 0.03125, %v1054_v30 }
 0x5b6   : > { %v1056_v32 = vsub.f32 %v1829_v28, %v1055_v31 }
 0x5b8   : > { %v1057_v33 = vmul.f32 %v1056_v32, %v1056_v32 }
 0x5ba   : > { %v1058_v34 = vsel %vm275_vm0, %v1057_v33, 0.0 }
 0x5bb   : > { %1059 = vadd.xlane.f32.xlu0 %v1058_v34 }
 0x644   : > { %v1060_v38 = vpop.xlane.xlu0 %1059 }
 0x645   : > { %v1061_v39 = vmul.f32 0.03125, %v1060_v38 }
 0x647   : > { %v1062_v40 = vadd.f32 1e-05, %v1061_v39 }
 0x649   : > { %1557 = vrsqrt.f32 %v1062_v40 }
 0x656   : > { %v1558_v41 = vpop.eup %1557 }
 0x657   : > { %v1064_v42 = vmul.f32 %v1558_v41, %v1056_v32 }
 0x659   : > { %1463 = vmatmul.mubr.msk.f32.vlgmr.msra.gmra.mxu0 %vm275_vm0, %v1064_v42 }
 0x719   : > { %v1145_v52 = vpop.f32.mrf.mxu0 }
 0x71a   : > { %v1146_v53 = vadd.f32 %v1360_v51, %v1145_v52 }
 0x71b   : > { %v1464_v54 = vpop.f32.mrf.mxu0 }
 0x71c   : > { %v1150_v55 = vmul.f32 0.70710677, %v1146_v53  ;;  %v1149_v14 = vmul.f32 0.5, %v1146_v53 }
 0x71e   : > { %v1151_v56 = vand.u32 2147483647, %v1150_v55  ;;  %vm1171_vm5 = vcmp.ge.f32.partialorder %v1150_v55, 0.0 }
 0x720   : > { %v1152_v57 = vmul.f32 0.3275911, %v1151_v56  ;;  %v1165_v59 = vsub.f32 0.0, %v1151_v56 }
 0x722   : > { %v1153_v58 = vadd.f32 1.0, %v1152_v57  ;;  %v1166_v60 = vmul.f32 %v1165_v59, %v1151_v56 }
 0x724   : > { %1559 = vrcp.f32 %v1153_v58  ;;  %v1167_v63 = vmul.f32 1.442695, %v1166_v60 }
 0x726   : > { %1561 = vpow2.f32 %v1167_v63 }
 0x731   : > { %v1560_v61 = vpop.eup %1559 }
 0x732   : > { %v1156_v62 = vmul.f32 1.0614054, %v1560_v61 }
 0x733   : > { %v1562_v9 = vpop.eup %1561 }
 0x734   : > { %v1157_v1 = vadd.f32 -1.4531521, %v1156_v62 }
 0x736   : > { %v1158_v8 = vmul.f32 %v1560_v61, %v1157_v1 }
 0x738   : > { %v1159_v2 = vadd.f32 1.4214138, %v1158_v8 }
 0x73a   : > { %v1160_v3 = vmul.f32 %v1560_v61, %v1159_v2 }
 0x73c   : > { %v1161_v4 = vadd.f32 -0.28449672, %v1160_v3 }
 0x73e   : > { %v1162_v5 = vmul.f32 %v1560_v61, %v1161_v4 }
 0x740   : > { %v1163_v6 = vadd.f32 0.2548296, %v1162_v5 }
 0x742   : > { %v1164_v7 = vmul.f32 %v1560_v61, %v1163_v6 }
 0x744   : > { %v1169_v10 = vmul.f32 %v1562_v9, %v1164_v7 }
 0x746   : > { %v1170_v11 = vsub.f32 1.0, %v1169_v10 }
 0x748   : > { %v1172_v12 = vsub.f32 0.0, %v1170_v11 }
 0x74a   : > { %v1173_v13 = vsel %vm1171_vm5, %v1170_v11, %v1172_v12 }
 0x74b   : > { %v1174_v15 = vadd.f32 1.0, %v1173_v13 }
 0x74d   : > { %v1175_v16 = vmul.f32 %v1174_v15, %v1149_v14 }
 0x74f   : > { %1482 = vmatmul.mubr.msk.f32.vlgmr.msra.gmra.mxu1 %vm1191_vm6, %v1175_v16 }
 0x80f   : > { %v1261_v18 = vpop.f32.mrf.mxu1 }
 0x810   : > { %v1262_v19 = vadd.f32 %v1362_v17, %v1261_v18 }
 0x811   : > { %v1483_v20 = vpop.f32.mrf.mxu1 }
 0x812   : > { %v1265_v21 = vadd.f32 %v1262_v19, %v1829_v28 }
 0x814   : > { %1266 = vst.msk [vmem:[%s269_s17] sm:$0xff] %vm275_vm0, %v1265_v21 }
 0x815   : > { %1576 = shalt.err (!%p1573_p3)
}
 0x816   : > { %s1577_s13 = scalar_lea.hbm %s1279_s21, 128  ;;  %s1581_s15 = scalar_lea.hbm %s1931_s7, 256 }
 0x817   : > { %p1578_p4 = scmp.ne.s32.totalorder %s1279_s21, %s1577_s13  ;;  %p1582_p9 = scmp.lt.s32.totalorder %s1279_s21, %s1931_s7 }
 0x818   : > { %p1583_p10 = scmp.lt.s32.totalorder %s1581_s15, %s1577_s13 }
 0x819   : > { %p1579_p7 = pnand %p1578_p4, %p1720_p5 }
 0x81a   : > { %p1584_p11 = por %p1583_p10, %p1582_p9 }
 0x81b   : > { %p1580_p8 = pneg %p1579_p7 }
 0x81d   : > { %p1585_p12 = pnand %p1584_p11, %p1580_p8 }
 0x81f   : > { %1588 = shalt.err (!%p1585_p12)
}
 0x820   : > { %1484 = dma.vmem_to_hbm [thread:$0]  (%p1720_p5), %s1282_s18, 128, %s1279_s21, %s1268_s22  }
 0x821 PF: > { %p1490_p13 = scmp.ge.s32.totalorder %s1623_s27, 2  ;;  %s1293_s19 = sand.u32 1, %s1611_s24  }
 0x822   : > { %s1294_s20 = scalar_lea.sflag [#allocation3], %s1293_s19 }
 0x823   : > { %p1487_p0 = pnand %p1490_p13, %p1724_p6 }
 0x825   : > { %p1488_p1 = pneg %p1487_p0 }
 0x827   : > { %1606 = dma.done.wait (%p1488_p1), %s1294_s20, 128  }
 0x828   : > { %1608 = vsyncadd (%p1488_p1), %s1294_s20, 4294967168  ;;  %p17_p2 = scmp.ge.s32.totalorder %s1707_s30, 4   ;;  %s1934_s24 = smov %s1615_s25 }
 0x829   : > { %s1935_s25 = smov %s1619_s26  ;;  %s1936_s26 = smov %s1718_s10 }
 0x82a   : > { %s1937_s27 = smov %s1707_s30  ;;  %19 = sbr.rel (!%p17_p2) target bundleno = 3 (0x3), region = 83 }
 0x82f   :  { %1299 = vsyncpa [#allocation3], 1 }
 0x830   :  { %1301 = vsyncpa [#allocation3 + $0x1], 1 }

</bundles_post_ra>
